<compile_context>
chip_gen: v7x
topology: tpu7x:2x2x1
jax: 0.10.0
libtpu: 0.0.40
codegen_flags: <defaults>
</compile_context>

<pallas_src>
import functools

import jax
import jax.numpy as jnp
from jax.experimental import pallas as pl
from jax.experimental.pallas import tpu as pltpu


def _round_up(x, m):
    return ((x + m - 1) // m) * m


def _vmem_budget():
    """Pick (f32-equivalent tile byte budget, scoped-VMEM limit) per chip."""
    try:
        info = pltpu.get_tpu_info()
        vmem = int(getattr(info, "vmem_capacity_bytes", 64 * 1024 * 1024))
    except Exception:
        vmem = 64 * 1024 * 1024  # conservative fallback
    if vmem >= 96 * 1024 * 1024:
        # v5e / v6e: 128 MiB VMEM per TensorCore -> big tiles, high limit.
        return 8 * 1024 * 1024, 96 * 1024 * 1024
    # v7x: 64 MiB VMEM per TensorCore, ~2.3x HBM bandwidth -> ~4 MiB tiles.
    return 4 * 1024 * 1024, 48 * 1024 * 1024


def _focal_loss_kernel(logits_ref, side_ref, loss_ref, *, gamma, n_valid, block_n):
    i = pl.program_id(0)

    x = logits_ref[...]                                    # [TN, C], input dtype
    tn = x.shape[0]

    # Row max in the input dtype (exact, order-preserving); fold the f32 cast
    # into the subtract so no standalone f32 tile copy stays live.
    m = jnp.max(x, axis=-1, keepdims=True)                 # [TN, 1]
    m32 = m.astype(jnp.float32)
    shifted = x.astype(jnp.float32) - m32                  # [TN, C] f32, <= 0
    sumexp = jnp.sum(jnp.exp(shifted), axis=-1, keepdims=True)   # [TN, 1]

    logit_t = side_ref[:, 0:1]                             # [TN, 1] f32 (wrapper gather)
    w_t = side_ref[:, 1:2]                                 # [TN, 1] f32 (weight[target])

    # cross_entropy(reduction='none', weight=w) == w[t] * (logsumexp - logit_t),
    # with logsumexp = m + log(sum exp(x - m)).
    ce = w_t * (jnp.log(sumexp) + m32 - logit_t)           # [TN, 1]

    # focal modulation: (1 - exp(-ce))**gamma * ce  (gamma specialized at trace time)
    p = jnp.exp(-ce)
    omp = 1.0 - p
    g = float(gamma)
    if g == 0.0:
        loss = ce
    elif g == 1.0:
        loss = omp * ce
    elif g.is_integer() and 2.0 <= g <= 4.0:
        mod = omp
        for _ in range(int(g) - 1):
            mod = mod * omp
        loss = mod * ce
    else:
        loss = jnp.power(omp, g) * ce

    # Rows past the real batch (partial last tile) hold garbage -> zero them.
    row = jax.lax.broadcasted_iota(jnp.int32, (tn, 1), 0) + i * block_n
    loss_ref[...] = jnp.where(row < n_valid, loss, 0.0)


def focal_loss_tpu(logits, target, weight=None, gamma=1.0, block_rows=None):
    n, c = logits.shape
    target = target.astype(jnp.int32)

    # Wrapper-side gathers: each touches only N elements, replacing an [N, C]
    # one-hot multiply + cross-lane reduce inside the kernel.
    logit_t = jnp.take_along_axis(logits, target[:, None], axis=-1).astype(jnp.float32)
    if weight is None:
        w_t = jnp.ones((n, 1), dtype=jnp.float32)
    else:
        w_t = jnp.asarray(weight, dtype=jnp.float32)[target][:, None]
    side = jnp.concatenate([logit_t, w_t], axis=-1)        # [N, 2] f32, one DMA stream

    # Batch tile: multiple of the input dtype's sublane packing, sized so one
    # tile's f32 intermediates fit the per-generation budget.  No padding of
    # the inputs anywhere.
    itemsize = jnp.dtype(logits.dtype).itemsize
    sublane = {4: 8, 2: 16, 1: 32}.get(itemsize, 8)
    tile_budget, vmem_limit = _vmem_budget()
    c_phys = _round_up(c, 128)                             # physical lanes per row
    rows_budget = max(sublane, (tile_budget // (c_phys * 4) // sublane) * sublane)
    if block_rows is None:
        tn = rows_budget
    else:
        tn = min(rows_budget, max(sublane, (int(block_rows) // sublane) * sublane))
    if tn >= n:
        tn = n                                             # single full-extent block
    num_blocks = -(-n // tn)

    per_row = pl.pallas_call(
        functools.partial(_focal_loss_kernel,
                          gamma=float(gamma), n_valid=n, block_n=tn),
        out_shape=jax.ShapeDtypeStruct((n, 1), jnp.float32),
        grid=(num_blocks,),
        in_specs=[
            pl.BlockSpec((tn, c), lambda i: (i, 0)),       # logits tile (dtype preserved)
            pl.BlockSpec((tn, 2), lambda i: (i, 0)),       # fused [logit_t, w_t] tile
        ],
        out_specs=pl.BlockSpec((tn, 1), lambda i: (i, 0)),  # per-row loss tile
        compiler_params=pltpu.CompilerParams(
            dimension_semantics=("parallel",),
            vmem_limit_bytes=vmem_limit,
        ),
    )(logits, side)

    # reduction='none' followed by .mean()  ->  sum over real rows / N
    return jnp.sum(per_row) / n


class FocalLoss:
    """Mirror of the PyTorch FocalLoss module (forward only)."""

    def __init__(self, weight=None, gamma=1.0):
        assert gamma >= 0
        self.gamma = gamma
        self.weight = weight

    def __call__(self, out, target):
        logits = out["logits"]
        return focal_loss_tpu(logits, target, weight=self.weight, gamma=self.gamma)


def _reference(logits, target, weight, gamma):
    logits = logits.astype(jnp.float32)
    logp = jax.nn.log_softmax(logits, axis=-1)
    nll = -jnp.take_along_axis(logp, target[:, None].astype(jnp.int32), axis=-1)[:, 0]
    if weight is None:
        w_t = jnp.ones_like(nll)
    else:
        w_t = jnp.asarray(weight, jnp.float32)[target]
    ce = w_t * nll
    p = jnp.exp(-ce)
    return jnp.mean((1.0 - p) ** gamma * ce)


if __name__ == "__main__":
    key = jax.random.PRNGKey(0)
    k1, k2, k3 = jax.random.split(key, 3)

    # Case 1: simple shapes — N=8, C=32, f32, gamma=1.0, no class weights.
    N, C = 8, 32
    logits = jax.random.normal(k1, (N, C), dtype=jnp.float32)
    target = jax.random.randint(k2, (N,), 0, C, dtype=jnp.int32)
    loss_fn = FocalLoss(weight=None, gamma=1.0)
    loss = jax.block_until_ready(loss_fn({"logits": logits}, target))
    ref = _reference(logits, target, None, 1.0)
    assert jnp.allclose(loss, ref, rtol=1e-5, atol=1e-5), (loss, ref)

    # Case 2: awkward shapes — N=20 with a forced block_rows=16 (multi-block
    # grid + partial last tile, no batch padding), C=37 (unaligned lanes, no
    # class padding), class weights, integer gamma > 1 (repeated-multiply path).
    N2, C2 = 20, 37
    k4, k5, k6, k7 = jax.random.split(k3, 4)
    logits2 = jax.random.normal(k4, (N2, C2), dtype=jnp.float32)
    target2 = jax.random.randint(k5, (N2,), 0, C2, dtype=jnp.int32)
    weight2 = jax.random.uniform(k6, (C2,), minval=0.5, maxval=1.5, dtype=jnp.float32)
    loss2 = jax.block_until_ready(
        focal_loss_tpu(logits2, target2, weight=weight2, gamma=2.0, block_rows=16))
    ref2 = _reference(logits2, target2, weight2, 2.0)
    assert jnp.allclose(loss2, ref2, rtol=1e-5, atol=1e-5), (loss2, ref2)

    # Case 3: bf16 logits (dtype-preserving DMA path), fractional gamma
    # (jnp.power path), class weights, single full-extent block.
    N3, C3 = 24, 37
    k8, k9 = jax.random.split(k7, 2)
    logits3 = jax.random.normal(k8, (N3, C3), dtype=jnp.float32).astype(jnp.bfloat16)
    target3 = jax.random.randint(k9, (N3,), 0, C3, dtype=jnp.int32)
    loss_fn3 = FocalLoss(weight=weight2, gamma=2.5)
    loss3 = jax.block_until_ready(loss_fn3({"logits": logits3}, target3))
    ref3 = _reference(logits3, target3, weight2, 2.5)
    assert jnp.allclose(loss3, ref3, rtol=1e-5, atol=1e-5), (loss3, ref3)

    print("KERNEL_OK")
</pallas_src>

<mosaic_0001>
module attributes {stable_mosaic.version = 11 : i64} {
  func.func @_focal_loss_kernel(%arg0: i32, %arg1: memref<8x32xf32, #tpu.memory_space<vmem>>, %arg2: memref<8x2xf32, #tpu.memory_space<vmem>>, %arg3: memref<8x1xf32, #tpu.memory_space<vmem>>) attributes {dimension_semantics = [#tpu.dimension_semantics<parallel>], iteration_bounds = array<i64: 1>, scalar_prefetch = 0 : i64, scratch_operands = 0 : i64, tpu.core_type = #tpu.core_type<tc>, window_params = [{transform_indices = @transform_0, window_bounds = array<i64: 8, 32>}, {transform_indices = @transform_1, window_bounds = array<i64: 8, 2>}, {transform_indices = @transform_2, window_bounds = array<i64: 8, 1>}]} {
    %c0 = arith.constant 0 : index
    %c0_0 = arith.constant 0 : index
    %0 = vector.load %arg1[%c0, %c0_0] : memref<8x32xf32, #tpu.memory_space<vmem>>, vector<8x32xf32>
    %cst = arith.constant dense<0xFF800000> : vector<8xf32>
    %1 = vector.multi_reduction <maximumf>, %0, %cst [1] : vector<8x32xf32> to vector<8xf32>
    %2 = vector.shape_cast %1 : vector<8xf32> to vector<8x1xf32>
    %3 = vector.broadcast %2 : vector<8x1xf32> to vector<8x32xf32>
    %4 = arith.subf %0, %3 : vector<8x32xf32>
    %5 = math.exp %4 : vector<8x32xf32>
    %cst_1 = arith.constant dense<0.000000e+00> : vector<8xf32>
    %6 = vector.multi_reduction <add>, %5, %cst_1 [1] : vector<8x32xf32> to vector<8xf32>
    %7 = vector.shape_cast %6 : vector<8xf32> to vector<8x1xf32>
    %c0_2 = arith.constant 0 : index
    %c0_3 = arith.constant 0 : index
    %8 = vector.load %arg2[%c0_2, %c0_3] : memref<8x2xf32, #tpu.memory_space<vmem>>, vector<8x1xf32>
    %c0_4 = arith.constant 0 : index
    %c1 = arith.constant 1 : index
    %9 = vector.load %arg2[%c0_4, %c1] : memref<8x2xf32, #tpu.memory_space<vmem>>, vector<8x1xf32>
    %10 = math.log %7 : vector<8x1xf32>
    %11 = arith.addf %10, %2 : vector<8x1xf32>
    %12 = arith.subf %11, %8 : vector<8x1xf32>
    %13 = arith.mulf %9, %12 : vector<8x1xf32>
    %cst_5 = arith.constant 0.000000e+00 : f32
    %14 = vector.broadcast %cst_5 : f32 to vector<8x1xf32>
    %15 = arith.subf %14, %13 : vector<8x1xf32>
    %16 = math.exp %15 : vector<8x1xf32>
    %cst_6 = arith.constant 1.000000e+00 : f32
    %17 = vector.broadcast %cst_6 : f32 to vector<8x1xf32>
    %18 = arith.subf %17, %16 : vector<8x1xf32>
    %19 = arith.mulf %18, %13 : vector<8x1xf32>
    %20 = tpu.iota {dimensions = array<i32: 0>} : vector<8x1xi32>
    %c8_i32 = arith.constant 8 : i32
    %21 = arith.muli %arg0, %c8_i32 : i32
    %22 = vector.broadcast %21 : i32 to vector<8x1xi32>
    %23 = arith.addi %20, %22 : vector<8x1xi32>
    %c8_i32_7 = arith.constant 8 : i32
    %24 = vector.broadcast %c8_i32_7 : i32 to vector<8x1xi32>
    %25 = arith.cmpi slt, %23, %24 : vector<8x1xi32>
    %cst_8 = arith.constant 0.000000e+00 : f32
    %26 = vector.broadcast %cst_8 : f32 to vector<8x1xf32>
    %27 = arith.select %25, %19, %26 : vector<8x1xi1>, vector<8x1xf32>
    %c0_9 = arith.constant 0 : index
    %c0_10 = arith.constant 0 : index
    %28 = vector.load %arg3[%c0_9, %c0_10] : memref<8x1xf32, #tpu.memory_space<vmem>>, vector<8x1xf32>
    tpu.vector_store %arg3[%c0_9, %c0_10], %27 {strides = array<i32>} : memref<8x1xf32, #tpu.memory_space<vmem>>, vector<8x1xf32>,
    return
  }
  func.func @transform_0(%arg0: i32) -> (i32, i32) {
    %c0_i32 = arith.constant 0 : i32
    %c0_i32_0 = arith.constant 0 : i32
    return %arg0, %c0_i32 : i32, i32
  }
  func.func @transform_1(%arg0: i32) -> (i32, i32) {
    %c0_i32 = arith.constant 0 : i32
    %c0_i32_0 = arith.constant 0 : i32
    return %arg0, %c0_i32 : i32, i32
  }
  func.func @transform_2(%arg0: i32) -> (i32, i32) {
    %c0_i32 = arith.constant 0 : i32
    %c0_i32_0 = arith.constant 0 : i32
    return %arg0, %c0_i32 : i32, i32
  }
}

</mosaic_0001>

<bundles_post_ra>
// kernel: tpu_custom_call.1
= control target key start
LH: loop header
LB: loop body
LE: loop exit
PB: predicated region body
PF: predicated region fallthrough
CT: control target
= control target key end

     0   :  { %vm12_vm0 = vcmask 261120   ;;  %s63_s13 = smov 127   ;;  %vm48_vm1 = vcmask 7168   ;;  %s88_s0 = inlined_call_operand.vmem [shape: f32[8,32], index: 0, kind: input, shape index: {}]   ;;  %s89_s1 = inlined_call_operand.vmem [shape: f32[8,2], index: 1, kind: input, shape index: {}]   ;;  %s90_s2 = inlined_call_operand.vmem [shape: f32[8,1], index: 2, kind: output, shape index: {}]  }
   0x1   :  { %v11_v0 = vld [vmem:[%s88_s0] sm:$0xff]  ;;  %s62_s0 = smov 1  }
   0x2   :  { %v13_v1 = vsel %vm12_vm0, %v11_v0, -inf  ;;  %v22_v10 = vld [vmem:[%s89_s1] sm:$0xff] }
   0x3   :  { %14 = vmax.xlane.f32.xlu0 %v13_v1 }
  0x90   :  { %v15_v2 = vpop.xlane.xlu0 %14 }
  0x91   :  { %v16_v3 = vsub.f32 %v11_v0, %v15_v2 }
  0x93   :  { %v17_v4 = vmul.f32 1.442695, %v16_v3 }
  0x95   :  { %56 = vpow2.f32 %v17_v4 }
  0x9f   :  { %v57_v5 = vpop.eup %56 }
  0xa0   :  { %v19_v6 = vsel %vm12_vm0, %v57_v5, 0.0 }
  0xa1   :  { %20 = vadd.xlane.f32.xlu0 %v19_v6 }
 0x12e   :  { %v21_v7 = vpop.xlane.xlu0 %20 }
 0x12f   :  { %58 = vlog2.f32 %v21_v7 }
 0x139   :  { %v59_v8 = vpop.eup %58 }
 0x13a   :  { %v24_v9 = vmul.f32 0.6931472, %v59_v8 }
 0x13c   :  { %v25_v11 = vadd.f32 %v24_v9, %v15_v2 }
 0x13e   :  { %v26_v12 = vsub.f32 %v25_v11, %v22_v10 }
 0x140   :  { %28 = vrot.lane.b32.xlu1 %v26_v12, %s62_s0 }
 0x1b2   :  { %v29_v13 = vpop.permute.xlu1 %28 }
 0x1b3   :  { %v31_v14 = vmul.f32 %v29_v13, %v22_v10 }
 0x1b5   :  { %v32_v15 = vsub.f32 0.0, %v31_v14 }
 0x1b7   :  { %v33_v16 = vmul.f32 1.442695, %v32_v15 }
 0x1b9   :  { %60 = vpow2.f32 %v33_v16 }
 0x1c3   :  { %v61_v17 = vpop.eup %60 }
 0x1c4   :  { %v35_v18 = vsub.f32 1.0, %v61_v17 }
 0x1c6   :  { %v36_v19 = vmul.f32 %v35_v18, %v31_v14 }
 0x1c8   :  { %45 = vrot.lane.b32.xlu1 %v36_v19, %s63_s13 }
 0x23a   :  { %v46_v20 = vpop.permute.xlu1 %45 }
 0x23b   :  { %49 = vst.msk [vmem:[%s90_s2] sm:$0xff] %vm48_vm1, %v46_v20 }

</bundles_post_ra>
